<compile_context>
chip_gen: v5e
topology: v5e:2x2
jax: 0.10.0
libtpu: 0.0.40
codegen_flags: <defaults>
</compile_context>

<pallas_src>
import functools

import numpy as np
import jax
import jax.numpy as jnp
from jax import lax
from jax.experimental import pallas as pl
from jax.experimental.pallas import tpu as pltpu


# ----------------------------------------------------------------------------
# In-kernel helpers
# ----------------------------------------------------------------------------
def _triangular_weights(width):
    """Rebuilds [x + b if x < 0 else -x + b for x in linspace(-b, b, W)],
    b = W // 2, i.e. w(x) = b - |x|, from a lane iota.  (1, W) row."""
    b = float(width // 2)
    step = 2.0 * b / (width - 1.0) if width > 1 else 0.0
    col = lax.broadcasted_iota(jnp.int32, (1, width), 1).astype(jnp.float32)
    x = col * jnp.float32(step) - jnp.float32(b)
    return jnp.float32(b) - jnp.abs(x)


def _frame_reward(puck_ref, goal_ref, w_row, thresh):
    """reward = sum(s*w) + sum(s*w*g), zeroed if sum(s) > thresh,
    s = sigmoid(puck plane).  H is reduced before the column weight:
        r = sum_w( w * (sum_h(s) + sum_h(s*g)) )
    so per-(H,W)-element work is a single multiply; sum_h(s) is shared with
    the threshold test."""
    x = puck_ref[...].astype(jnp.float32)
    g = goal_ref[...].astype(jnp.float32)
    s = 0.5 * jnp.tanh(0.5 * x) + 0.5                      # sigmoid on EUP
    colsum_s = jnp.sum(s, axis=0, keepdims=True)           # (1, W)
    colsum_sg = jnp.sum(s * g, axis=0, keepdims=True)      # (1, W)
    r = jnp.sum(w_row * (colsum_s + colsum_sg))            # scalar
    total_s = jnp.sum(colsum_s)                            # scalar (shared)
    return jnp.where(total_s > thresh, jnp.float32(0.0), r)


def _visual_loss_kernel(*refs, width, thresh, fuse_epilogue, lp_index):
    """4D path (fuse_epilogue=True):
         refs = (lp_smem, puck_a, goal_a, puck_b, goal_b, out_smem)
         out  = (r_a - r_b if != 0 else 0.001) * lp[lp_index]
       3D path (fuse_epilogue=False):
         refs = (puck_a, goal_a, puck_b, goal_b, out_smem)
         out  = r_a - r_b
    """
    if fuse_epilogue:
        lp_ref, pa_ref, ga_ref, pb_ref, gb_ref, out_ref = refs
    else:
        pa_ref, ga_ref, pb_ref, gb_ref, out_ref = refs

    w_row = _triangular_weights(width)
    r_a = _frame_reward(pa_ref, ga_ref, w_row, thresh)     # frame BEFORE action
    r_b = _frame_reward(pb_ref, gb_ref, w_row, thresh)     # frame AFTER action

    diff = r_a - r_b
    if fuse_epilogue:
        # `if diff != 0 else 0.001`, then multiply by log_prob, all in-kernel.
        diff = jnp.where(diff != 0.0, diff, jnp.float32(0.001))
        diff = diff * lp_ref[lp_index]
    out_ref[0, 0] = diff


# ----------------------------------------------------------------------------
# Wrappers: BlockSpec-based channel/frame selection, fused scalar epilogue.
# ----------------------------------------------------------------------------
def _smem_spec():
    return pl.BlockSpec(memory_space=pltpu.MemorySpace.SMEM)


def _loss_4d(inp, log_probs, team_no, thresh):
    B, C, H, W = inp.shape
    if B < 2:
        raise ValueError(f"4D visual_loss path needs at least 2 frames, got B={B}")

    def plane_spec(frame, chan):
        # Squeezed frame/channel dims with static indices in the index_map:
        # the DMA fetches exactly one (H, W) plane straight from the NCHW tensor.
        return pl.BlockSpec((None, None, H, W), lambda i: (frame, chan, 0, 0))

    lp = jnp.asarray(log_probs, jnp.float32).reshape(-1)   # (B,) log-probs -> SMEM

    kernel = functools.partial(
        _visual_loss_kernel, width=W, thresh=float(thresh),
        fuse_epilogue=True, lp_index=B - 2)

    out = pl.pallas_call(
        kernel,
        out_shape=jax.ShapeDtypeStruct((1, 1), jnp.float32),
        grid=(1,),
        in_specs=[
            _smem_spec(),                 # log-prob vector, whole in SMEM
            plane_spec(B - 2, 0),         # puck plane, frame before action
            plane_spec(B - 2, team_no),   # goal plane, frame before action
            plane_spec(B - 1, 0),         # puck plane, frame after action
            plane_spec(B - 1, team_no),   # goal plane, frame after action
        ],
        out_specs=_smem_spec(),           # single fused scalar in SMEM
        compiler_params=pltpu.CompilerParams(
            dimension_semantics=("arbitrary",)),
    )(lp, inp, inp, inp, inp)
    return out[0, 0]


def _loss_3d(inp, target, team_no, thresh):
    C, H, W = inp.shape

    def plane_spec(chan):
        return pl.BlockSpec((None, H, W), lambda i: (chan, 0, 0))

    kernel = functools.partial(
        _visual_loss_kernel, width=W, thresh=float(thresh),
        fuse_epilogue=False, lp_index=0)

    out = pl.pallas_call(
        kernel,
        out_shape=jax.ShapeDtypeStruct((1, 1), jnp.float32),
        grid=(1,),
        in_specs=[
            plane_spec(0), plane_spec(team_no),   # frame BEFORE action
            plane_spec(0), plane_spec(team_no),   # frame AFTER action
        ],
        out_specs=_smem_spec(),
        compiler_params=pltpu.CompilerParams(
            dimension_semantics=("arbitrary",)),
    )(inp, inp, target, target)
    return out[0, 0]


def visual_loss_forward(inp, target=None, team_no=1, image_dims=(100, 130)):
    """Reproduces visual_loss.forward.

    4D input (B, 3, H, W): `target` holds per-frame log-probs.  The reference
    Python loop overwrites reward_delta every iteration, so only the last
    consecutive pair (B-2, B-1) and log_prob = target[B-2] contribute; the
    kernel computes exactly (and only) that, with the full scalar epilogue
    fused in.
    3D input (3, H, W): plain reward difference between `inp` and `target`.
    """
    # NOTE: thresh uses image_dims (as the PyTorch module does), NOT the
    # actual H, W of the input.
    thresh = (1.0 / 6.0) * image_dims[0] * image_dims[1]
    if inp.ndim == 4:
        return _loss_4d(inp, target, team_no, thresh)
    return _loss_3d(inp, target, team_no, thresh)
    # TODO(synk): the reference 3D path also does `print('instance')`; host-side
    # printing is intentionally omitted.


# ----------------------------------------------------------------------------
# Pure-JAX reference (unfused, mirrors the PyTorch module) for self-checking.
# ----------------------------------------------------------------------------
def _ref_weights(W):
    b = W // 2
    xs = np.linspace(-b, b, W)
    w = np.array([x + b if x < 0 else -x + b for x in xs], dtype=np.float32)
    return jnp.asarray(w).reshape(1, W)


def _ref_get_reward(frame, team_no, weights_row, thresh):
    s = jax.nn.sigmoid(frame[0])
    sw = s * weights_row
    r = jnp.sum(sw) + jnp.sum(sw * frame[team_no])
    return jnp.where(jnp.sum(s) > thresh, jnp.float32(0.0), r)


def _ref_forward_4d(inp, target, team_no, image_dims=(100, 130)):
    B = inp.shape[0]
    W = inp.shape[-1]
    thresh = (1.0 / 6.0) * image_dims[0] * image_dims[1]
    w = _ref_weights(W)
    ri = _ref_get_reward(inp[B - 2], team_no, w, thresh)
    rt = _ref_get_reward(inp[B - 1], team_no, w, thresh)
    diff = ri - rt
    diff = jnp.where(diff != 0, diff, jnp.float32(0.001))
    return diff * target[B - 2]


def _ref_forward_3d(inp, target, team_no, image_dims=(100, 130)):
    W = inp.shape[-1]
    thresh = (1.0 / 6.0) * image_dims[0] * image_dims[1]
    w = _ref_weights(W)
    return (_ref_get_reward(inp, team_no, w, thresh)
            - _ref_get_reward(target, team_no, w, thresh))


if __name__ == "__main__":
    key = jax.random.PRNGKey(0)
    k1, k2 = jax.random.split(key)

    # Small shapes consistent with forward(): batch of frames, 3 channels
    # (puck, goal team 1, goal team 2), 16x16 spatial.
    B, C, H, W = 4, 3, 16, 16
    x = jax.random.normal(k1, (B, C, H, W), dtype=jnp.float32)
    log_probs = jax.random.normal(k2, (B,), dtype=jnp.float32)

    # 4D (batched policy-gradient) path, fused epilogue.
    out4 = jax.block_until_ready(visual_loss_forward(x, log_probs, team_no=1))
    ref4 = jax.block_until_ready(_ref_forward_4d(x, log_probs, team_no=1))
    np.testing.assert_allclose(np.asarray(out4), np.asarray(ref4),
                               rtol=1e-5, atol=1e-5)

    # 3D (single frame pair) path, exercising team_no channel selection.
    out3 = jax.block_until_ready(visual_loss_forward(x[0], x[1], team_no=2))
    ref3 = jax.block_until_ready(_ref_forward_3d(x[0], x[1], team_no=2))
    np.testing.assert_allclose(np.asarray(out3), np.asarray(ref3),
                               rtol=1e-5, atol=1e-5)

    print("KERNEL_OK")
</pallas_src>

<mosaic_0001>
module attributes {stable_mosaic.version = 11 : i64} {
  func.func @_visual_loss_kernel(%arg0: i32, %arg1: memref<4xf32, #tpu.memory_space<smem>>, %arg2: memref<1x1x16x16xf32, #tpu.memory_space<vmem>>, %arg3: memref<1x1x16x16xf32, #tpu.memory_space<vmem>>, %arg4: memref<1x1x16x16xf32, #tpu.memory_space<vmem>>, %arg5: memref<1x1x16x16xf32, #tpu.memory_space<vmem>>, %arg6: memref<1x1xf32, #tpu.memory_space<smem>>) attributes {dimension_semantics = [#tpu.dimension_semantics<arbitrary>], iteration_bounds = array<i64: 1>, scalar_prefetch = 0 : i64, scratch_operands = 0 : i64, tpu.core_type = #tpu.core_type<tc>, window_params = [{transform_indices = @transform_0, window_bounds = array<i64: 4>}, {transform_indices = @transform_1, window_bounds = array<i64: 1, 1, 16, 16>}, {transform_indices = @transform_2, window_bounds = array<i64: 1, 1, 16, 16>}, {transform_indices = @transform_3, window_bounds = array<i64: 1, 1, 16, 16>}, {transform_indices = @transform_4, window_bounds = array<i64: 1, 1, 16, 16>}, {transform_indices = @transform_5, window_bounds = array<i64: 1, 1>}]} {
    %0 = tpu.iota {dimensions = array<i32: 1>} : vector<1x16xi32>
    %1 = arith.sitofp %0 : vector<1x16xi32> to vector<1x16xf32>
    %cst = arith.constant 1.06666672 : f32
    %2 = vector.broadcast %cst : f32 to vector<1x16xf32>
    %3 = arith.mulf %1, %2 : vector<1x16xf32>
    %cst_0 = arith.constant 8.000000e+00 : f32
    %4 = vector.broadcast %cst_0 : f32 to vector<1x16xf32>
    %5 = arith.subf %3, %4 : vector<1x16xf32>
    %6 = math.absf %5 : vector<1x16xf32>
    %cst_1 = arith.constant 8.000000e+00 : f32
    %7 = vector.broadcast %cst_1 : f32 to vector<1x16xf32>
    %8 = arith.subf %7, %6 : vector<1x16xf32>
    %c0 = arith.constant 0 : index
    %c0_2 = arith.constant 0 : index
    %c0_3 = arith.constant 0 : index
    %c0_4 = arith.constant 0 : index
    %9 = vector.load %arg2[%c0, %c0_2, %c0_3, %c0_4] : memref<1x1x16x16xf32, #tpu.memory_space<vmem>>, vector<1x1x16x16xf32>
    %10 = vector.shape_cast %9 : vector<1x1x16x16xf32> to vector<16x16xf32>
    %c0_5 = arith.constant 0 : index
    %c0_6 = arith.constant 0 : index
    %c0_7 = arith.constant 0 : index
    %c0_8 = arith.constant 0 : index
    %11 = vector.load %arg3[%c0_5, %c0_6, %c0_7, %c0_8] : memref<1x1x16x16xf32, #tpu.memory_space<vmem>>, vector<1x1x16x16xf32>
    %12 = vector.shape_cast %11 : vector<1x1x16x16xf32> to vector<16x16xf32>
    %cst_9 = arith.constant 5.000000e-01 : f32
    %13 = vector.broadcast %cst_9 : f32 to vector<16x16xf32>
    %14 = arith.mulf %13, %10 : vector<16x16xf32>
    %15 = math.tanh %14 : vector<16x16xf32>
    %cst_10 = arith.constant 5.000000e-01 : f32
    %16 = vector.broadcast %cst_10 : f32 to vector<16x16xf32>
    %17 = arith.mulf %16, %15 : vector<16x16xf32>
    %cst_11 = arith.constant 5.000000e-01 : f32
    %18 = vector.broadcast %cst_11 : f32 to vector<16x16xf32>
    %19 = arith.addf %17, %18 : vector<16x16xf32>
    %cst_12 = arith.constant dense<0.000000e+00> : vector<16xf32>
    %20 = vector.multi_reduction <add>, %19, %cst_12 [0] : vector<16x16xf32> to vector<16xf32>
    %21 = vector.shape_cast %20 : vector<16xf32> to vector<1x16xf32>
    %22 = arith.mulf %19, %12 : vector<16x16xf32>
    %cst_13 = arith.constant dense<0.000000e+00> : vector<16xf32>
    %23 = vector.multi_reduction <add>, %22, %cst_13 [0] : vector<16x16xf32> to vector<16xf32>
    %24 = vector.shape_cast %23 : vector<16xf32> to vector<1x16xf32>
    %25 = arith.addf %21, %24 : vector<1x16xf32>
    %26 = arith.mulf %8, %25 : vector<1x16xf32>
    %27 = vector.shape_cast %26 : vector<1x16xf32> to vector<1x1x16xf32>
    %cst_14 = arith.constant dense<0.000000e+00> : vector<1xf32>
    %28 = vector.multi_reduction <add>, %27, %cst_14 [1, 2] : vector<1x1x16xf32> to vector<1xf32>
    %29 = vector.shape_cast %28 : vector<1xf32> to vector<1x1x1xf32>
    %30 = vector.extract %29[0, 0, 0] : f32 from vector<1x1x1xf32>
    %31 = vector.shape_cast %21 : vector<1x16xf32> to vector<1x1x16xf32>
    %cst_15 = arith.constant dense<0.000000e+00> : vector<1xf32>
    %32 = vector.multi_reduction <add>, %31, %cst_15 [1, 2] : vector<1x1x16xf32> to vector<1xf32>
    %33 = vector.shape_cast %32 : vector<1xf32> to vector<1x1x1xf32>
    %34 = vector.extract %33[0, 0, 0] : f32 from vector<1x1x1xf32>
    %cst_16 = arith.constant 2166.66675 : f32
    %35 = arith.cmpf ogt, %34, %cst_16 : f32
    %cst_17 = arith.constant 0.000000e+00 : f32
    %36 = arith.select %35, %cst_17, %30 : f32
    %c0_18 = arith.constant 0 : index
    %c0_19 = arith.constant 0 : index
    %c0_20 = arith.constant 0 : index
    %c0_21 = arith.constant 0 : index
    %37 = vector.load %arg4[%c0_18, %c0_19, %c0_20, %c0_21] : memref<1x1x16x16xf32, #tpu.memory_space<vmem>>, vector<1x1x16x16xf32>
    %38 = vector.shape_cast %37 : vector<1x1x16x16xf32> to vector<16x16xf32>
    %c0_22 = arith.constant 0 : index
    %c0_23 = arith.constant 0 : index
    %c0_24 = arith.constant 0 : index
    %c0_25 = arith.constant 0 : index
    %39 = vector.load %arg5[%c0_22, %c0_23, %c0_24, %c0_25] : memref<1x1x16x16xf32, #tpu.memory_space<vmem>>, vector<1x1x16x16xf32>
    %40 = vector.shape_cast %39 : vector<1x1x16x16xf32> to vector<16x16xf32>
    %cst_26 = arith.constant 5.000000e-01 : f32
    %41 = vector.broadcast %cst_26 : f32 to vector<16x16xf32>
    %42 = arith.mulf %41, %38 : vector<16x16xf32>
    %43 = math.tanh %42 : vector<16x16xf32>
    %cst_27 = arith.constant 5.000000e-01 : f32
    %44 = vector.broadcast %cst_27 : f32 to vector<16x16xf32>
    %45 = arith.mulf %44, %43 : vector<16x16xf32>
    %cst_28 = arith.constant 5.000000e-01 : f32
    %46 = vector.broadcast %cst_28 : f32 to vector<16x16xf32>
    %47 = arith.addf %45, %46 : vector<16x16xf32>
    %cst_29 = arith.constant dense<0.000000e+00> : vector<16xf32>
    %48 = vector.multi_reduction <add>, %47, %cst_29 [0] : vector<16x16xf32> to vector<16xf32>
    %49 = vector.shape_cast %48 : vector<16xf32> to vector<1x16xf32>
    %50 = arith.mulf %47, %40 : vector<16x16xf32>
    %cst_30 = arith.constant dense<0.000000e+00> : vector<16xf32>
    %51 = vector.multi_reduction <add>, %50, %cst_30 [0] : vector<16x16xf32> to vector<16xf32>
    %52 = vector.shape_cast %51 : vector<16xf32> to vector<1x16xf32>
    %53 = arith.addf %49, %52 : vector<1x16xf32>
    %54 = arith.mulf %8, %53 : vector<1x16xf32>
    %55 = vector.shape_cast %54 : vector<1x16xf32> to vector<1x1x16xf32>
    %cst_31 = arith.constant dense<0.000000e+00> : vector<1xf32>
    %56 = vector.multi_reduction <add>, %55, %cst_31 [1, 2] : vector<1x1x16xf32> to vector<1xf32>
    %57 = vector.shape_cast %56 : vector<1xf32> to vector<1x1x1xf32>
    %58 = vector.extract %57[0, 0, 0] : f32 from vector<1x1x1xf32>
    %59 = vector.shape_cast %49 : vector<1x16xf32> to vector<1x1x16xf32>
    %cst_32 = arith.constant dense<0.000000e+00> : vector<1xf32>
    %60 = vector.multi_reduction <add>, %59, %cst_32 [1, 2] : vector<1x1x16xf32> to vector<1xf32>
    %61 = vector.shape_cast %60 : vector<1xf32> to vector<1x1x1xf32>
    %62 = vector.extract %61[0, 0, 0] : f32 from vector<1x1x1xf32>
    %cst_33 = arith.constant 2166.66675 : f32
    %63 = arith.cmpf ogt, %62, %cst_33 : f32
    %cst_34 = arith.constant 0.000000e+00 : f32
    %64 = arith.select %63, %cst_34, %58 : f32
    %65 = arith.subf %36, %64 : f32
    %cst_35 = arith.constant 0.000000e+00 : f32
    %66 = arith.cmpf one, %65, %cst_35 : f32
    %cst_36 = arith.constant 1.000000e-03 : f32
    %67 = arith.select %66, %65, %cst_36 : f32
    %c2 = arith.constant 2 : index
    %68 = memref.load %arg1[%c2] : memref<4xf32, #tpu.memory_space<smem>>
    %69 = arith.mulf %67, %68 : f32
    %c0_37 = arith.constant 0 : index
    %c0_38 = arith.constant 0 : index
    %70 = memref.load %arg6[%c0_37, %c0_38] : memref<1x1xf32, #tpu.memory_space<smem>>
    memref.store %69, %arg6[%c0_37, %c0_38] : memref<1x1xf32, #tpu.memory_space<smem>>
    return
  }
  func.func @transform_0(%arg0: i32) -> i32 {
    %c0_i32 = arith.constant 0 : i32
    %c0_i32_0 = arith.constant 0 : i32
    return %c0_i32 : i32
  }
  func.func @transform_1(%arg0: i32) -> (i32, i32, i32, i32) {
    %c2_i32 = arith.constant 2 : i32
    %c0_i32 = arith.constant 0 : i32
    %c0_i32_0 = arith.constant 0 : i32
    %c0_i32_1 = arith.constant 0 : i32
    %c0_i32_2 = arith.constant 0 : i32
    return %c2_i32, %c0_i32, %c0_i32_0, %c0_i32_1 : i32, i32, i32, i32
  }
  func.func @transform_2(%arg0: i32) -> (i32, i32, i32, i32) {
    %c2_i32 = arith.constant 2 : i32
    %c1_i32 = arith.constant 1 : i32
    %c0_i32 = arith.constant 0 : i32
    %c0_i32_0 = arith.constant 0 : i32
    %c0_i32_1 = arith.constant 0 : i32
    return %c2_i32, %c1_i32, %c0_i32, %c0_i32_0 : i32, i32, i32, i32
  }
  func.func @transform_3(%arg0: i32) -> (i32, i32, i32, i32) {
    %c3_i32 = arith.constant 3 : i32
    %c0_i32 = arith.constant 0 : i32
    %c0_i32_0 = arith.constant 0 : i32
    %c0_i32_1 = arith.constant 0 : i32
    %c0_i32_2 = arith.constant 0 : i32
    return %c3_i32, %c0_i32, %c0_i32_0, %c0_i32_1 : i32, i32, i32, i32
  }
  func.func @transform_4(%arg0: i32) -> (i32, i32, i32, i32) {
    %c3_i32 = arith.constant 3 : i32
    %c1_i32 = arith.constant 1 : i32
    %c0_i32 = arith.constant 0 : i32
    %c0_i32_0 = arith.constant 0 : i32
    %c0_i32_1 = arith.constant 0 : i32
    return %c3_i32, %c1_i32, %c0_i32, %c0_i32_0 : i32, i32, i32, i32
  }
  func.func @transform_5(%arg0: i32) -> (i32, i32) {
    %c0_i32 = arith.constant 0 : i32
    %c0_i32_0 = arith.constant 0 : i32
    %c0_i32_1 = arith.constant 0 : i32
    return %c0_i32, %c0_i32_0 : i32, i32
  }
}

</mosaic_0001>

<bundles_post_ra>
// kernel: tpu_custom_call.1
= control target key start
LH: loop header
LB: loop body
LE: loop exit
PB: predicated region body
PF: predicated region fallthrough
CT: control target
= control target key end

     0   :  { %10 = vsyncpa [#allocation4], 0  ;;  %s480_s0 = inlined_call_operand.hbm [shape: f32[4], index: 0, kind: input, shape index: {}]   ;;  %s481_s1 = inlined_call_operand.hbm [shape: f32[4,3,16,16], index: 1, kind: input, shape index: {}]   ;;  %s482_s2 = inlined_call_operand.hbm [shape: f32[4,3,16,16], index: 2, kind: input, shape index: {}]   ;;  %s483_s3 = inlined_call_operand.hbm [shape: f32[4,3,16,16], index: 3, kind: input, shape index: {}]   ;;  %s484_s4 = inlined_call_operand.hbm [shape: f32[4,3,16,16], index: 4, kind: input, shape index: {}]   ;;  %s485_s5 = inlined_call_operand.hbm [shape: f32[1,1], index: 5, kind: output, shape index: {}]  }
   0x1   :  { %11 = vsyncpa [#allocation3], 0 }
   0x2   :  { %12 = vsyncpa [#allocation8], 0 }
   0x3   :  { %13 = vsyncpa [#allocation11], 0 }
   0x4   :  { %14 = vsyncpa [#allocation5], 0  ;;  %s42_s20 = scalar_lea.hbm %s482_s2, 112  ;;  %s404_s22 = smov [#allocation7]  }
   0x5   :  { %s43_s21 = sshll.u32 %s42_s20, 4  ;;  %s45_s23 = sshll.u32 %s404_s22, 4  ;;  %s44_s21 = int_to_ptr.hbm [resolvable:$true] %s43_s21  ;;  %s46_s23 = int_to_ptr.vmem [resolvable:$true] %s45_s23 }
   0x6   :  { %s405_s24 = smov 128   ;;  %s406_s25 = smov 8  }
   0x7   :  { %51 = dma.hbm_to_vmem [thread:$0]  %s44_s21, 256, %s46_s23, [#allocation8], %s405_s24, %s405_s24, %s406_s25  }
   0x8   :  { %s20_s28 = sshll.u32 %s480_s0, 4  ;;  %s28_s2 = scalar_lea.hbm %s481_s1, 96  ;;  %s21_s28 = int_to_ptr.hbm [resolvable:$true] %s20_s28 }
   0x9   :  { %s407_s6 = smov [#allocation2]   ;;  %s29_s7 = sshll.u32 %s28_s2, 4  ;;  %s30_s7 = int_to_ptr.hbm [resolvable:$true] %s29_s7 }
   0xa   :  { %23 = dma.hbm_to_smem %s21_s28, 16, %s407_s6, [#allocation4]  }
   0xb   :  { %s408_s8 = smov [#allocation6]   ;;  %s56_s12 = scalar_lea.hbm %s483_s3, 144 }
   0xc   :  { %s31_s9 = sshll.u32 %s408_s8, 4  ;;  %s57_s0 = sshll.u32 %s56_s12, 4  ;;  %s32_s9 = int_to_ptr.vmem [resolvable:$true] %s31_s9  ;;  %s58_s0 = int_to_ptr.hbm [resolvable:$true] %s57_s0 }
   0xd   :  { %37 = dma.hbm_to_vmem [thread:$0]  %s30_s7, 256, %s32_s9, [#allocation3], %s405_s24, %s405_s24, %s406_s25  }
   0xe   :  { %s409_s13 = smov [#allocation9]   ;;  %s70_s16 = scalar_lea.hbm %s484_s4, 160 }
   0xf   :  { %s59_s14 = sshll.u32 %s409_s13, 4  ;;  %s71_s17 = sshll.u32 %s70_s16, 4  ;;  %s60_s14 = int_to_ptr.vmem [resolvable:$true] %s59_s14  ;;  %s72_s17 = int_to_ptr.hbm [resolvable:$true] %s71_s17 }
  0x10   :  { %65 = dma.hbm_to_vmem [thread:$0]  %s58_s0, 256, %s60_s14, [#allocation8], %s405_s24, %s405_s24, %s406_s25  }
  0x11   :  { %s410_s3 = smov [#allocation10]  }
  0x12   :  { %s73_s18 = sshll.u32 %s410_s3, 4  ;;  %s74_s18 = int_to_ptr.vmem [resolvable:$true] %s73_s18 }
  0x13   :  { %79 = dma.hbm_to_vmem [thread:$0]  %s72_s17, 256, %s74_s18, [#allocation11], %s405_s24, %s405_s24, %s406_s25  }
  0x14   :  { %394 = dma.done.wait [#allocation4], 16  }
  0x15   :  { %395 = vsyncadd [#allocation4], 4294967280 }
  0x16   :  { %396 = dma.done.wait [#allocation3], 256  }
  0x17   :  { %397 = vsyncadd [#allocation3], 4294967040 }
  0x18   :  { %398 = dma.done.wait [#allocation8], 512  }
  0x19   :  { %399 = vsyncadd [#allocation8], 4294966784 }
  0x1a   :  { %400 = dma.done.wait [#allocation11], 256  }
  0x1b   :  { %401 = vsyncadd [#allocation11], 4294967040 }
  0x1c   :  { %100 = sfence }
  0x1d   :  { %v166_v0 = vld [vmem:[#allocation9] sm:$0xff]  ;;  %v167_v1 = vld [vmem:[#allocation9 + $0x8] sm:$0xff]  ;;  %v101_v8 = vlaneseq  ;;  %vm120_vm0 = vcmask 130048   ;;  %v168_v14 = vld [vmem:[#allocation10] sm:$0xff]  ;;  %vm143_vm1 = vcmask 122880   ;;  %s249_s22 = sld [smem:[#allocation2 + $0x2]] }
  0x1e   :  { %v170_v2 = vmul.f32 0.5, %v166_v0  ;;  %v171_v3 = vmul.f32 0.5, %v167_v1  ;;  %v108_v4 = vld [vmem:[#allocation6] sm:$0xff]  ;;  %v109_v5 = vld [vmem:[#allocation6 + $0x8] sm:$0xff]  ;;  %v169_v17 = vld [vmem:[#allocation10 + $0x8] sm:$0xff]  ;;  %s234_s26 = sshll.u32 %s485_s5, 4  ;;  %s235_s26 = int_to_ptr.hbm [resolvable:$true] %s234_s26 }
  0x1f   :  { %v112_v6 = vmul.f32 0.5, %v108_v4  ;;  %v113_v7 = vmul.f32 0.5, %v109_v5  ;;  %v102_v10 = vand.u32 127, %v101_v8  ;;  %v110_v22 = vld [vmem:[#allocation7] sm:$0xff]  ;;  %v111_v26 = vld [vmem:[#allocation7 + $0x8] sm:$0xff]  ;;  %s411_s28 = smov [#allocation12]  }
  0x20   :  { %266 = vtanh.f32 %v170_v2 }
  0x21   :  { %268 = vtanh.f32 %v171_v3  ;;  %v103_v20 = vcvt.s32.f32 %v102_v10 }
  0x22   :  { %270 = vtanh.f32 %v112_v6 }
  0x23   :  { %272 = vtanh.f32 %v113_v7  ;;  %v104_v35 = vmul.f32 1.0666667, %v103_v20 }
  0x25   :  { %v248_v48 = vadd.f32 -8.0, %v104_v35 }
  0x26   :  { %v267_v9 = vpop.eup %266 }
  0x27   :  { %v269_v11 = vpop.eup %268  ;;  %v174_v12 = vmul.f32 0.5, %v267_v9  ;;  %v106_v57 = vand.u32 2147483647, %v248_v48 }
  0x28   :  { %v271_v13 = vpop.eup %270  ;;  %v175_v15 = vmul.f32 0.5, %v269_v11 }
  0x29   :  { %v273_v16 = vpop.eup %272  ;;  %v176_v18 = vadd.f32 0.5, %v174_v12  ;;  %v116_v19 = vmul.f32 0.5, %v271_v13  ;;  %v107_v2 = vsub.f32 8.0, %v106_v57 }
  0x2a   :  { %v177_v21 = vadd.f32 0.5, %v175_v15  ;;  %v117_v23 = vmul.f32 0.5, %v273_v16 }
  0x2b   :  { %v178_v24 = vsel %vm120_vm0, %v176_v18, 0.0  ;;  %v187_v25 = vmul.f32 %v176_v18, %v168_v14  ;;  %v118_v27 = vadd.f32 0.5, %v116_v19 }
  0x2c   :  { %v179_v28 = vsel %vm120_vm0, %v177_v21, 0.0  ;;  %v188_v29 = vmul.f32 %v177_v21, %v169_v17  ;;  %v119_v30 = vadd.f32 0.5, %v117_v23 }
  0x2d   :  { %v180_v31 = vadd.f32 %v179_v28, %v178_v24  ;;  %v189_v32 = vsel %vm120_vm0, %v187_v25, 0.0  ;;  %v121_v33 = vsel %vm120_vm0, %v118_v27, 0.0  ;;  %v130_v34 = vmul.f32 %v118_v27, %v110_v22 }
  0x2e   :  { %v190_v36 = vsel %vm120_vm0, %v188_v29, 0.0  ;;  %v122_v37 = vsel %vm120_vm0, %v119_v30, 0.0  ;;  %v131_v38 = vmul.f32 %v119_v30, %v111_v26 }
  0x2f   :  { %v181_v39 = vrot.slane %v180_v31, 4  ;;  %v191_v40 = vadd.f32 %v190_v36, %v189_v32  ;;  %v123_v41 = vadd.f32 %v122_v37, %v121_v33  ;;  %v132_v42 = vsel %vm120_vm0, %v130_v34, 0.0 }
  0x30   :  { %v133_v43 = vsel %vm120_vm0, %v131_v38, 0.0 }
  0x31   :  { %v182_v44 = vadd.f32 %v181_v39, %v180_v31  ;;  %v192_v45 = vrot.slane %v191_v40, 4  ;;  %v124_v46 = vrot.slane %v123_v41, 4  ;;  %v134_v47 = vadd.f32 %v133_v43, %v132_v42 }
  0x33   :  { %v183_v49 = vrot.slane %v182_v44, 2  ;;  %v193_v50 = vadd.f32 %v192_v45, %v191_v40  ;;  %v125_v51 = vadd.f32 %v124_v46, %v123_v41  ;;  %v135_v52 = vrot.slane %v134_v47, 4 }
  0x35   :  { %v184_v53 = vadd.f32 %v183_v49, %v182_v44  ;;  %v194_v54 = vrot.slane %v193_v50, 2  ;;  %v126_v55 = vrot.slane %v125_v51, 2  ;;  %v136_v56 = vadd.f32 %v135_v52, %v134_v47 }
  0x37   :  { %v185_v58 = vrot.slane %v184_v53, 1  ;;  %v195_v59 = vadd.f32 %v194_v54, %v193_v50  ;;  %v127_v60 = vadd.f32 %v126_v55, %v125_v51  ;;  %v137_v61 = vrot.slane %v136_v56, 2 }
  0x39   :  { %v186_v62 = vadd.f32 %v185_v58, %v184_v53  ;;  %v196_v63 = vrot.slane %v195_v59, 1  ;;  %v128_v0 = vrot.slane %v127_v60, 1  ;;  %v138_v1 = vadd.f32 %v137_v61, %v136_v56 }
  0x3b   :  { %v197_v3 = vadd.f32 %v196_v63, %v195_v59  ;;  %v129_v4 = vadd.f32 %v128_v0, %v127_v60  ;;  %v139_v5 = vrot.slane %v138_v1, 1  ;;  %v210_v13 = vsel %vm143_vm1, %v186_v62, 0.0 }
  0x3d   :  { %v198_v6 = vadd.f32 %v197_v3, %v186_v62  ;;  %v140_v7 = vadd.f32 %v139_v5, %v138_v1  ;;  %v154_v14 = vsel %vm143_vm1, %v129_v4, 0.0 }
  0x3f   :  { %v199_v8 = vmul.f32 %v198_v6, %v107_v2  ;;  %v141_v9 = vadd.f32 %v140_v7, %v129_v4 }
  0x41   :  { %v200_v10 = vsel %vm143_vm1, %v199_v8, 0.0  ;;  %v142_v11 = vmul.f32 %v141_v9, %v107_v2 }
  0x42   :  { %201 = vadd.xlane.f32.xlu1 %v200_v10 }
  0x43   :  { %v144_v12 = vsel %vm143_vm1, %v142_v11, 0.0 }
  0x44   :  { %145 = vadd.xlane.f32.xlu0 %v144_v12 }
  0x4a   :  { %211 = vadd.xlane.f32.xlu1 %v210_v13 }
  0x4c   :  { %155 = vadd.xlane.f32.xlu0 %v154_v14 }
  0xb5   :  { %v202_v15 = vpop.xlane.xlu1 %201 }
  0xb6   :  { %v203_v16 = vrot.slane %v202_v15, 4 }
  0xb7   :  { %v146_v17 = vpop.xlane.xlu0 %145 }
  0xb8   :  { %v147_v18 = vrot.slane %v146_v17, 4  ;;  %v204_v20 = vadd.f32 %v203_v16, %v202_v15 }
  0xba   :  { %v148_v19 = vadd.f32 %v147_v18, %v146_v17  ;;  %v205_v25 = vrot.slane %v204_v20, 2 }
  0xbc   :  { %v149_v21 = vrot.slane %v148_v19, 2  ;;  %v206_v33 = vadd.f32 %v205_v25, %v204_v20 }
  0xbd   :  { %v212_v22 = vpop.xlane.xlu1 %211 }
  0xbe   :  { %v213_v23 = vrot.slane %v212_v22, 4  ;;  %v150_v24 = vadd.f32 %v149_v21, %v148_v19  ;;  %v207_v38 = vrot.slane %v206_v33, 1 }
  0xbf   :  { %v156_v26 = vpop.xlane.xlu0 %155 }
  0xc0   :  { %v214_v27 = vadd.f32 %v213_v23, %v212_v22  ;;  %v157_v28 = vrot.slane %v156_v26, 4  ;;  %v151_v29 = vrot.slane %v150_v24, 1  ;;  %v208_v42 = vadd.f32 %v207_v38, %v206_v33 }
  0xc2   :  { %v215_v30 = vrot.slane %v214_v27, 2  ;;  %v158_v31 = vadd.f32 %v157_v28, %v156_v26  ;;  %v152_v32 = vadd.f32 %v151_v29, %v150_v24 }
  0xc4   :  { %v216_v34 = vadd.f32 %v215_v30, %v214_v27  ;;  %v159_v35 = vrot.slane %v158_v31, 2  ;;  %250 = vpush %v152_v32 }
  0xc6   :  { %v160_v36 = vadd.f32 %v159_v35, %v158_v31  ;;  %v217_v37 = vrot.slane %v216_v34, 1 }
  0xc8   :  { %v161_v39 = vrot.slane %v160_v36, 1  ;;  %v218_v41 = vadd.f32 %v217_v37, %v216_v34 }
  0xca   :  { %v162_v40 = vadd.f32 %v161_v39, %v160_v36 }
  0xcc   :  { %252 = vpush %v162_v40 }
  0xcd   :  { %254 = vpush %v208_v42 }
  0xce   :  { %256 = vpush %v218_v41 }
  0xf5   :  { %s251_s4 = spop %250 }
  0xfd   :  { %s253_s19 = spop %252 }
  0xfe   :  { %p164_p0 = scmp.gt.f32.partialorder %s253_s19, 2166.6667  ;;  %s255_s20 = spop %254 }
  0xff   :  { %s257_s21 = spop %256 }
 0x100   :  { %s487_s4 = smov (%p164_p0, %s251_s4), 0.0  ;;  %p220_p1 = scmp.gt.f32.partialorder %s257_s21, 2166.6667 }
 0x102   :  { %s489_s20 = smov (%p220_p1, %s255_s20), 0.0 }
 0x103   :  { %s222_s23 = ssub.f32 %s487_s4, %s489_s20 }
 0x105   :  { %p223_p2 = scmp.ne.f32.partialorder %s222_s23, 0.0 }
 0x107   :  { %s491_s23 = smov (!%p223_p2, %s222_s23), 0.001 }
 0x108   :  { %s226_s27 = smul.f32 %s249_s22, %s491_s23 }
 0x10a   :  { %228 = sst [smem:[#allocation12]] %s226_s27 }
 0x10b   :  { %237 = dma.smem_to_hbm %s411_s28, 16, %s235_s26, [#allocation5]  }
 0x10c   :  { %402 = dma.done.wait [#allocation5], 16  }
 0x10d   :  { %403 = vsyncadd [#allocation5], 4294967280 }
 0x10e   :  { %242 = sfence }
 0x10f   :  { %243 = vsyncpa [#allocation3], 1 }
 0x110   :  { %244 = vsyncpa [#allocation8], 1 }
 0x111   :  { %245 = vsyncpa [#allocation11], 1 }
 0x112   :  { %246 = vsyncpa [#allocation4], 1 }
 0x113   :  { %247 = vsyncpa [#allocation5], 1 }

</bundles_post_ra>
